<compile_context>
chip_gen: v7x
topology: tpu7x:2x2x1
jax: 0.10.0
libtpu: 0.0.40
codegen_flags: <defaults>
</compile_context>

<pallas_src>
import jax
import jax.numpy as jnp
from jax.experimental import pallas as pl
from jax.experimental.pallas import tpu as pltpu

LANE = 128
SUBLANE = 8
MAX_TILE_ROWS = 1024  # (1024,128) f32 = 512 KiB/array; 7 streams x 2 buffers ~ 7 MiB


def _round_up(x, m):
    return ((x + m - 1) // m) * m


def _padded_layout(batch):
    """Return (rows, tile_rows, padded_batch) for a dense (rows, 128) layout."""
    rows = _round_up(pl.cdiv(batch, LANE), SUBLANE)
    tile_rows = min(MAX_TILE_ROWS, rows)
    rows = _round_up(rows, tile_rows)  # every grid tile is full -> unmasked stores
    return rows, tile_rows, rows * LANE


def _to_tiles(v, rows, b_pad):
    v = v.astype(jnp.float32)
    return jnp.pad(v, (0, b_pad - v.shape[0])).reshape(rows, LANE)


def _read_params(params_ref):
    return (params_ref[0], params_ref[1], params_ref[2], params_ref[3],
            params_ref[4], params_ref[5], params_ref[6], params_ref[7],
            params_ref[8])


def _lcne_step_kernel(params_ref, x0_ref, prev_lc_ref, prev_c_ref,
                      lc_out, ne_out, c_out, pupil_out):
    """One recurrence step on a (TILE_ROWS, 128) batch tile."""
    w_x, w_h, w_lc, w_c, w_lc_p, w_c_p, w_ne_p, b, lam = _read_params(params_ref)

    x0 = x0_ref[...]
    lc_t = jnp.tanh(w_x * x0 + w_h * prev_lc_ref[...] + b)
    ne_t = jax.nn.sigmoid(w_lc * lc_t)
    c_t = prev_c_ref[...] + (lam * w_lc) * ne_t + w_c * x0
    pupil_t = w_lc_p * lc_t + w_c_p * c_t + w_ne_p * ne_t

    lc_out[...] = lc_t
    ne_out[...] = ne_t
    c_out[...] = c_t
    pupil_out[...] = pupil_t


def lcne_cortex_fitter_basic(X, prev_LC, prev_Cortex, params):
    """Single forward step (matches LCNECortexFitterBasic.forward).

    X: (B, input_dim) f32; prev_LC, prev_Cortex: (B,) f32.
    params: (9,) f32 = [W_x, W_h, W_LC, W_C, W_LC_Pupil, W_C_Pupil, W_NE_Pupil,
                        b, lambda_cortex]
    Returns (LC_t, NE_t, C_t, Pupil_t), each (B,) f32.
    """
    B = X.shape[0]
    rows, tile_rows, b_pad = _padded_layout(B)

    x0 = _to_tiles(X[:, 0], rows, b_pad)  # glue: column extract + dense (R,128) pack
    lc = _to_tiles(prev_LC, rows, b_pad)
    c = _to_tiles(prev_Cortex, rows, b_pad)
    params = params.astype(jnp.float32)

    vec_shape = jax.ShapeDtypeStruct((rows, LANE), jnp.float32)
    vec_spec = pl.BlockSpec((tile_rows, LANE), lambda i: (i, 0))

    lc_t, ne_t, c_t, pupil_t = pl.pallas_call(
        _lcne_step_kernel,
        out_shape=(vec_shape, vec_shape, vec_shape, vec_shape),
        grid=(rows // tile_rows,),
        in_specs=[
            pl.BlockSpec(memory_space=pltpu.MemorySpace.SMEM),  # scalar params
            vec_spec, vec_spec, vec_spec,
        ],
        out_specs=(vec_spec, vec_spec, vec_spec, vec_spec),
        input_output_aliases={3: 2},  # reuse prev_Cortex HBM buffer for C_t
        compiler_params=pltpu.CompilerParams(
            dimension_semantics=("parallel",)),
    )(params, x0, lc, c)

    return tuple(o.reshape(b_pad)[:B] for o in (lc_t, ne_t, c_t, pupil_t))


def _lcne_seq_kernel(params_ref, x0_ref, lc0_ref, c0_ref,
                     lc_out, ne_out, c_out, pupil_out,
                     lc_state, c_state):
    """T recurrent steps; LC/C state lives in VMEM scratch across the time axis."""
    w_x, w_h, w_lc, w_c, w_lc_p, w_c_p, w_ne_p, b, lam = _read_params(params_ref)
    t = pl.program_id(1)

    @pl.when(t == 0)
    def _():
        lc_state[...] = lc0_ref[...]
        c_state[...] = c0_ref[...]

    x0 = x0_ref[0]
    lc_t = jnp.tanh(w_x * x0 + w_h * lc_state[...] + b)
    ne_t = jax.nn.sigmoid(w_lc * lc_t)
    c_t = c_state[...] + (lam * w_lc) * ne_t + w_c * x0
    pupil_t = w_lc_p * lc_t + w_c_p * c_t + w_ne_p * ne_t

    lc_state[...] = lc_t
    c_state[...] = c_t

    lc_out[0] = lc_t
    ne_out[0] = ne_t
    c_out[0] = c_t
    pupil_out[0] = pupil_t


def lcne_cortex_fitter_basic_sequence(X_seq, init_LC, init_Cortex, params):
    """Fused recurrence: T steps of the module in ONE pallas_call.

    X_seq: (T, B, input_dim); init_LC, init_Cortex: (B,).
    Returns (LC, NE, C, Pupil), each (T, B).
    """
    T, B = X_seq.shape[0], X_seq.shape[1]
    rows, tile_rows, b_pad = _padded_layout(B)

    x0 = X_seq[:, :, 0].astype(jnp.float32)
    x0 = jnp.pad(x0, ((0, 0), (0, b_pad - B))).reshape(T, rows, LANE)
    lc0 = _to_tiles(init_LC, rows, b_pad)
    c0 = _to_tiles(init_Cortex, rows, b_pad)
    params = params.astype(jnp.float32)

    seq_shape = jax.ShapeDtypeStruct((T, rows, LANE), jnp.float32)
    seq_spec = pl.BlockSpec((1, tile_rows, LANE), lambda i, t: (t, i, 0))
    state_spec = pl.BlockSpec((tile_rows, LANE), lambda i, t: (i, 0))

    outs = pl.pallas_call(
        _lcne_seq_kernel,
        out_shape=(seq_shape, seq_shape, seq_shape, seq_shape),
        grid=(rows // tile_rows, T),
        in_specs=[
            pl.BlockSpec(memory_space=pltpu.MemorySpace.SMEM),  # scalar params
            seq_spec, state_spec, state_spec,
        ],
        out_specs=(seq_spec, seq_spec, seq_spec, seq_spec),
        scratch_shapes=[
            pltpu.VMEM((tile_rows, LANE), jnp.float32),  # LC carry
            pltpu.VMEM((tile_rows, LANE), jnp.float32),  # Cortex carry
        ],
        compiler_params=pltpu.CompilerParams(
            dimension_semantics=("parallel", "arbitrary")),
    )(params, x0, lc0, c0)

    return tuple(o.reshape(T, b_pad)[:, :B] for o in outs)


if __name__ == "__main__":
    lambda_cortex = 0.1
    # [W_x, W_h, W_LC, W_C, W_LC_Pupil, W_C_Pupil, W_NE_Pupil, b, lambda_cortex]
    params = jnp.array([0.5, 0.7, 0.8, 0.5, 0.4, 0.3, 0.2, 0.1, lambda_cortex],
                       dtype=jnp.float32)

    key = jax.random.PRNGKey(0)
    k1, k2, k3, k4 = jax.random.split(key, 4)
    B, input_dim, T = 8, 4, 6
    X = jax.random.normal(k1, (B, input_dim), dtype=jnp.float32)
    prev_LC = jax.random.normal(k2, (B,), dtype=jnp.float32)
    prev_Cortex = jax.random.normal(k3, (B,), dtype=jnp.float32)

    def ref_step(x0, lc, c):
        LC = jnp.tanh(0.5 * x0 + 0.7 * lc + 0.1)
        NE = jax.nn.sigmoid(0.8 * LC)
        C = c + lambda_cortex * 0.8 * NE + 0.5 * x0
        P = 0.4 * LC + 0.3 * C + 0.2 * NE
        return LC, NE, C, P

    # ---- single step (exact module forward semantics) ----
    LC_t, NE_t, C_t, Pupil_t = lcne_cortex_fitter_basic(X, prev_LC, prev_Cortex, params)
    jax.block_until_ready((LC_t, NE_t, C_t, Pupil_t))
    LC_r, NE_r, C_r, P_r = ref_step(X[:, 0], prev_LC, prev_Cortex)
    assert jnp.allclose(LC_t, LC_r, atol=1e-5)
    assert jnp.allclose(NE_t, NE_r, atol=1e-5)
    assert jnp.allclose(C_t, C_r, atol=1e-5)
    assert jnp.allclose(Pupil_t, P_r, atol=1e-5)

    # ---- fused T-step recurrence (state resident in VMEM) ----
    X_seq = jax.random.normal(k4, (T, B, input_dim), dtype=jnp.float32)
    LC_s, NE_s, C_s, P_s = lcne_cortex_fitter_basic_sequence(
        X_seq, prev_LC, prev_Cortex, params)
    jax.block_until_ready((LC_s, NE_s, C_s, P_s))

    lc, c = prev_LC, prev_Cortex
    lc_ref, ne_ref, c_ref, p_ref = [], [], [], []
    for t in range(T):
        LC, NE, C, P = ref_step(X_seq[t, :, 0], lc, c)
        lc_ref.append(LC); ne_ref.append(NE); c_ref.append(C); p_ref.append(P)
        lc, c = LC, C
    assert jnp.allclose(LC_s, jnp.stack(lc_ref), atol=1e-5)
    assert jnp.allclose(NE_s, jnp.stack(ne_ref), atol=1e-5)
    assert jnp.allclose(C_s, jnp.stack(c_ref), atol=1e-5)
    assert jnp.allclose(P_s, jnp.stack(p_ref), atol=1e-5)

    print("KERNEL_OK")
</pallas_src>

<mosaic_0001>
module attributes {stable_mosaic.version = 11 : i64} {
  func.func @_lcne_step_kernel(%arg0: i32, %arg1: memref<9xf32, #tpu.memory_space<smem>>, %arg2: memref<8x128xf32, #tpu.memory_space<vmem>>, %arg3: memref<8x128xf32, #tpu.memory_space<vmem>>, %arg4: memref<8x128xf32, #tpu.memory_space<vmem>>, %arg5: memref<8x128xf32, #tpu.memory_space<vmem>>, %arg6: memref<8x128xf32, #tpu.memory_space<vmem>>, %arg7: memref<8x128xf32, #tpu.memory_space<vmem>>, %arg8: memref<8x128xf32, #tpu.memory_space<vmem>>) attributes {dimension_semantics = [#tpu.dimension_semantics<parallel>], iteration_bounds = array<i64: 1>, scalar_prefetch = 0 : i64, scratch_operands = 0 : i64, tpu.core_type = #tpu.core_type<tc>, window_params = [{transform_indices = @transform_0, window_bounds = array<i64: 9>}, {transform_indices = @transform_1, window_bounds = array<i64: 8, 128>}, {transform_indices = @transform_2, window_bounds = array<i64: 8, 128>}, {transform_indices = @transform_3, window_bounds = array<i64: 8, 128>}, {transform_indices = @transform_4, window_bounds = array<i64: 8, 128>}, {transform_indices = @transform_5, window_bounds = array<i64: 8, 128>}, {transform_indices = @transform_6, window_bounds = array<i64: 8, 128>}, {transform_indices = @transform_7, window_bounds = array<i64: 8, 128>}]} {
    %c0 = arith.constant 0 : index
    %0 = memref.load %arg1[%c0] : memref<9xf32, #tpu.memory_space<smem>>
    %c1 = arith.constant 1 : index
    %1 = memref.load %arg1[%c1] : memref<9xf32, #tpu.memory_space<smem>>
    %c2 = arith.constant 2 : index
    %2 = memref.load %arg1[%c2] : memref<9xf32, #tpu.memory_space<smem>>
    %c3 = arith.constant 3 : index
    %3 = memref.load %arg1[%c3] : memref<9xf32, #tpu.memory_space<smem>>
    %c4 = arith.constant 4 : index
    %4 = memref.load %arg1[%c4] : memref<9xf32, #tpu.memory_space<smem>>
    %c5 = arith.constant 5 : index
    %5 = memref.load %arg1[%c5] : memref<9xf32, #tpu.memory_space<smem>>
    %c6 = arith.constant 6 : index
    %6 = memref.load %arg1[%c6] : memref<9xf32, #tpu.memory_space<smem>>
    %c7 = arith.constant 7 : index
    %7 = memref.load %arg1[%c7] : memref<9xf32, #tpu.memory_space<smem>>
    %c8 = arith.constant 8 : index
    %8 = memref.load %arg1[%c8] : memref<9xf32, #tpu.memory_space<smem>>
    %c0_0 = arith.constant 0 : index
    %c0_1 = arith.constant 0 : index
    %9 = vector.load %arg2[%c0_0, %c0_1] : memref<8x128xf32, #tpu.memory_space<vmem>>, vector<8x128xf32>
    %10 = vector.broadcast %0 : f32 to vector<8x128xf32>
    %11 = arith.mulf %10, %9 : vector<8x128xf32>
    %c0_2 = arith.constant 0 : index
    %c0_3 = arith.constant 0 : index
    %12 = vector.load %arg3[%c0_2, %c0_3] : memref<8x128xf32, #tpu.memory_space<vmem>>, vector<8x128xf32>
    %13 = vector.broadcast %1 : f32 to vector<8x128xf32>
    %14 = arith.mulf %13, %12 : vector<8x128xf32>
    %15 = arith.addf %11, %14 : vector<8x128xf32>
    %16 = vector.broadcast %7 : f32 to vector<8x128xf32>
    %17 = arith.addf %15, %16 : vector<8x128xf32>
    %18 = math.tanh %17 : vector<8x128xf32>
    %19 = vector.broadcast %2 : f32 to vector<8x128xf32>
    %20 = arith.mulf %19, %18 : vector<8x128xf32>
    %21 = arith.negf %20 : vector<8x128xf32>
    %22 = math.exp %21 : vector<8x128xf32>
    %cst = arith.constant 1.000000e+00 : f32
    %23 = vector.broadcast %cst : f32 to vector<8x128xf32>
    %24 = arith.addf %23, %22 : vector<8x128xf32>
    %25 = arith.divf %23, %24 : vector<8x128xf32>
    %c0_4 = arith.constant 0 : index
    %c0_5 = arith.constant 0 : index
    %26 = vector.load %arg4[%c0_4, %c0_5] : memref<8x128xf32, #tpu.memory_space<vmem>>, vector<8x128xf32>
    %27 = arith.mulf %8, %2 : f32
    %28 = vector.broadcast %27 : f32 to vector<8x128xf32>
    %29 = arith.mulf %28, %25 : vector<8x128xf32>
    %30 = arith.addf %26, %29 : vector<8x128xf32>
    %31 = vector.broadcast %3 : f32 to vector<8x128xf32>
    %32 = arith.mulf %31, %9 : vector<8x128xf32>
    %33 = arith.addf %30, %32 : vector<8x128xf32>
    %34 = vector.broadcast %4 : f32 to vector<8x128xf32>
    %35 = arith.mulf %34, %18 : vector<8x128xf32>
    %36 = vector.broadcast %5 : f32 to vector<8x128xf32>
    %37 = arith.mulf %36, %33 : vector<8x128xf32>
    %38 = arith.addf %35, %37 : vector<8x128xf32>
    %39 = vector.broadcast %6 : f32 to vector<8x128xf32>
    %40 = arith.mulf %39, %25 : vector<8x128xf32>
    %41 = arith.addf %38, %40 : vector<8x128xf32>
    %c0_6 = arith.constant 0 : index
    %c0_7 = arith.constant 0 : index
    %42 = vector.load %arg5[%c0_6, %c0_7] : memref<8x128xf32, #tpu.memory_space<vmem>>, vector<8x128xf32>
    tpu.vector_store %arg5[%c0_6, %c0_7], %18 {strides = array<i32>} : memref<8x128xf32, #tpu.memory_space<vmem>>, vector<8x128xf32>,
    %c0_8 = arith.constant 0 : index
    %c0_9 = arith.constant 0 : index
    %43 = vector.load %arg6[%c0_8, %c0_9] : memref<8x128xf32, #tpu.memory_space<vmem>>, vector<8x128xf32>
    tpu.vector_store %arg6[%c0_8, %c0_9], %25 {strides = array<i32>} : memref<8x128xf32, #tpu.memory_space<vmem>>, vector<8x128xf32>,
    %c0_10 = arith.constant 0 : index
    %c0_11 = arith.constant 0 : index
    %44 = vector.load %arg7[%c0_10, %c0_11] : memref<8x128xf32, #tpu.memory_space<vmem>>, vector<8x128xf32>
    tpu.vector_store %arg7[%c0_10, %c0_11], %33 {strides = array<i32>} : memref<8x128xf32, #tpu.memory_space<vmem>>, vector<8x128xf32>,
    %c0_12 = arith.constant 0 : index
    %c0_13 = arith.constant 0 : index
    %45 = vector.load %arg8[%c0_12, %c0_13] : memref<8x128xf32, #tpu.memory_space<vmem>>, vector<8x128xf32>
    tpu.vector_store %arg8[%c0_12, %c0_13], %41 {strides = array<i32>} : memref<8x128xf32, #tpu.memory_space<vmem>>, vector<8x128xf32>,
    return
  }
  func.func @transform_0(%arg0: i32) -> i32 {
    %c0_i32 = arith.constant 0 : i32
    %c0_i32_0 = arith.constant 0 : i32
    return %c0_i32 : i32
  }
  func.func @transform_1(%arg0: i32) -> (i32, i32) {
    %c0_i32 = arith.constant 0 : i32
    %c0_i32_0 = arith.constant 0 : i32
    return %arg0, %c0_i32 : i32, i32
  }
  func.func @transform_2(%arg0: i32) -> (i32, i32) {
    %c0_i32 = arith.constant 0 : i32
    %c0_i32_0 = arith.constant 0 : i32
    return %arg0, %c0_i32 : i32, i32
  }
  func.func @transform_3(%arg0: i32) -> (i32, i32) {
    %c0_i32 = arith.constant 0 : i32
    %c0_i32_0 = arith.constant 0 : i32
    return %arg0, %c0_i32 : i32, i32
  }
  func.func @transform_4(%arg0: i32) -> (i32, i32) {
    %c0_i32 = arith.constant 0 : i32
    %c0_i32_0 = arith.constant 0 : i32
    return %arg0, %c0_i32 : i32, i32
  }
  func.func @transform_5(%arg0: i32) -> (i32, i32) {
    %c0_i32 = arith.constant 0 : i32
    %c0_i32_0 = arith.constant 0 : i32
    return %arg0, %c0_i32 : i32, i32
  }
  func.func @transform_6(%arg0: i32) -> (i32, i32) {
    %c0_i32 = arith.constant 0 : i32
    %c0_i32_0 = arith.constant 0 : i32
    return %arg0, %c0_i32 : i32, i32
  }
  func.func @transform_7(%arg0: i32) -> (i32, i32) {
    %c0_i32 = arith.constant 0 : i32
    %c0_i32_0 = arith.constant 0 : i32
    return %arg0, %c0_i32 : i32, i32
  }
}

</mosaic_0001>

<bundles_post_ra>
// kernel: tpu_custom_call.1
= control target key start
LH: loop header
LB: loop body
LE: loop exit
PB: predicated region body
PF: predicated region fallthrough
CT: control target
= control target key end

     0   :  { %13 = vsyncpa [#allocation5], 0  ;;  %s434_s0 = inlined_call_operand.vmem [shape: f32[9], index: 0, kind: input, shape index: {}]   ;;  %s435_s1 = inlined_call_operand.vmem [shape: f32[8,128], index: 1, kind: input, shape index: {}]   ;;  %s436_s2 = inlined_call_operand.vmem [shape: f32[8,128], index: 2, kind: input, shape index: {}]   ;;  %s437_s3 = inlined_call_operand.hbm [shape: f32[8,128], index: 3, kind: input, shape index: {}, may-alias: {3,6}]   ;;  %s438_s4 = inlined_call_operand.hbm [shape: f32[8,128], index: 4, kind: output, shape index: {0}]   ;;  %s439_s5 = inlined_call_operand.hbm [shape: f32[8,128], index: 5, kind: output, shape index: {1}]   ;;  %s440_s6 = inlined_call_operand.hbm [shape: f32[8,128], index: 6, kind: output, shape index: {2}, may-alias: {3,6}]   ;;  %s441_s7 = inlined_call_operand.hbm [shape: f32[8,128], index: 7, kind: output, shape index: {3}]  }
   0x1   :  { %14 = vsyncpa [#allocation3], 0 }
   0x2   :  { %15 = vsyncpa [#allocation4], 0 }
   0x3   :  { %16 = vsyncpa [#allocation9], 0 }
   0x4   :  { %17 = vsyncpa [#allocation12], 0  ;;  %s24_s26 = sshll.u32 %s434_s0, 4  ;;  %s25_s26 = int_to_ptr.vmem [resolvable:$true] %s24_s26 }
   0x5   :  { %s174_s27 = scalar_lea.vmem %s25_s26, 16  ;;  %p179_p1 = scmp.lt.s32.totalorder %s25_s26, %s25_s26 }
   0x6   :  { %p175_p0 = scmp.ne.s32.totalorder %s25_s26, %s174_s27  ;;  %p180_p2 = scmp.lt.s32.totalorder %s174_s27, %s174_s27 }
   0x8   :  { %p181_p3 = por %p180_p2, %p179_p1 }
   0xa   :  { %p182_p4 = pnand %p181_p3, %p175_p0 }
   0xc   :  { %185 = shalt.err (!%p182_p4)
}
   0xd   :  { %s306_s28 = smov [#allocation2]   ;;  %s307_s29 = smov [#allocation6]  }
   0xe   :  { %27 = dma.vmem_to_smem %s25_s26, 16, %s306_s28, [#allocation5]  }
   0xf   :  { %s38_s30 = sshll.u32 %s307_s29, 4  ;;  %s186_s10 = scalar_lea.hbm %s437_s3, 128  ;;  %s39_s30 = int_to_ptr.vmem [resolvable:$true] %s38_s30 }
  0x10   :  { %p187_p5 = scmp.ne.s32.totalorder %s437_s3, %s186_s10  ;;  %p190_p6 = scmp.lt.u32.totalorder %s186_s10, %s437_s3 }
  0x12   :  { %p192_p7 = pnand %p190_p6, %p187_p5 }
  0x14   :  { %195 = shalt.err (!%p192_p7)
}
  0x15   :  { %s196_s14 = scalar_lea.vmem %s39_s30, 128  ;;  %p201_p9 = scmp.lt.s32.totalorder %s39_s30, %s39_s30 }
  0x16   :  { %p197_p8 = scmp.ne.s32.totalorder %s39_s30, %s196_s14  ;;  %p202_p10 = scmp.lt.s32.totalorder %s196_s14, %s196_s14 }
  0x18   :  { %p203_p11 = por %p202_p10, %p201_p9 }
  0x1a   :  { %p204_p12 = pnand %p203_p11, %p197_p8 }
  0x1c   :  { %207 = shalt.err (!%p204_p12)
}
  0x1d   :  { %41 = dma.hbm_to_vmem [thread:$0]  %s437_s3, 128, %s39_s30, [#allocation3]  }
  0x1e   :  { %296 = dma.done.wait [#allocation5], 16  }
  0x1f   :  { %297 = vsyncadd [#allocation5], 4294967280 }
  0x20   :  { %298 = dma.done.wait [#allocation3], 128  }
  0x21   :  { %299 = vsyncadd [#allocation3], 4294967168 }
  0x22   :  { %48 = sfence }
  0x23   :  { %s49_s17 = sld [smem:[#allocation2]]  ;;  %s153_s18 = sld [smem:[#allocation2 + $0x1]]  ;;  %v58_v0 = vld [vmem:[%s435_s1] sm:$0xff] }
  0x24   :  { %s159_s19 = sld [smem:[#allocation2 + $0x7]]  ;;  %v61_v1 = vld [vmem:[%s436_s2] sm:$0xff]  ;;  %s373_s3 = sld [smem:[#allocation2 + $0x2]] }
  0x25   :  { %s308_s24 = smov [#allocation7]  }
  0x26   :  { %s102_s25 = sshll.u32 %s308_s24, 4  ;;  %s103_s25 = int_to_ptr.vmem [resolvable:$true] %s102_s25 }
  0x27   :  { %s208_s1 = scalar_lea.vmem %s103_s25, 128  ;;  %p213_p0 = scmp.lt.s32.totalorder %s103_s25, %s103_s25 }
  0x28   :  { %p209_p13 = scmp.ne.s32.totalorder %s103_s25, %s208_s1  ;;  %p214_p1 = scmp.lt.s32.totalorder %s208_s1, %s208_s1 }
  0x29   :  { %v59_v2 = vstv %s49_s17  ;;  %v62_v3 = vstv %s153_s18 }
  0x2a   :  { %v60_v4 = vmul.f32 %v59_v2, %v58_v0  ;;  %v63_v5 = vmul.f32 %v62_v3, %v61_v1  ;;  %v65_v6 = vstv %s159_s19  ;;  %v68_v9 = vstv %s373_s3  ;;  %p215_p2 = por %p214_p1, %p213_p0 }
  0x2c   :  { %v64_v7 = vadd.f32 %v63_v5, %v60_v4  ;;  %p216_p3 = pnand %p215_p2, %p209_p13 }
  0x2e   :  { %v66_v8 = vadd.f32 %v65_v6, %v64_v7 }
  0x30   :  { %168 = vtanh.f32 %v66_v8 }
  0x3a   :  { %v169_v10 = vpop.eup %168 }
  0x3b   :  { %v69_v11 = vmul.f32 %v169_v10, %v68_v9  ;;  %92 = vst [vmem:[#allocation7] sm:$0xff] %v169_v10 }
  0x3c   :  { %219 = shalt.err (!%p216_p3)
}
  0x3d   :  { %s220_s27 = scalar_lea.hbm %s438_s4, 128 }
  0x3e   :  { %p221_p4 = scmp.ne.s32.totalorder %s438_s4, %s220_s27  ;;  %p224_p5 = scmp.lt.u32.totalorder %s220_s27, %s438_s4 }
  0x40   :  { %p226_p6 = pnand %p224_p5, %p221_p4 }
  0x42   :  { %229 = shalt.err (!%p226_p6)
}
  0x43   :  { %105 = dma.vmem_to_hbm [thread:$0]  %s103_s25, 128, %s438_s4, [#allocation4]   ;;  %v161_v12 = vmul.f32 -1.442695, %v69_v11  ;;  %v76_v18 = vld [vmem:[#allocation6] sm:$0xff] }
  0x44   :  { %s160_s11 = sld [smem:[#allocation2 + $0x8]]  ;;  %s155_s12 = sld [smem:[#allocation2 + $0x3]] }
  0x45   :  { %170 = vpow2.f32 %v161_v12  ;;  %s389_s13 = sld [smem:[#allocation2 + $0x4]]  ;;  %s391_s14 = sld [smem:[#allocation2 + $0x5]] }
  0x46   :  { %s393_s15 = sld [smem:[#allocation2 + $0x6]]  ;;  %s309_s16 = smov [#allocation8]  }
  0x47   :  { %s112_s17 = sshll.u32 %s309_s16, 4  ;;  %s310_s4 = smov [#allocation10]   ;;  %s113_s17 = int_to_ptr.vmem [resolvable:$true] %s112_s17 }
  0x48   :  { %s122_s18 = sshll.u32 %s310_s4, 4  ;;  %s230_s19 = scalar_lea.vmem %s113_s17, 128  ;;  %s123_s18 = int_to_ptr.vmem [resolvable:$true] %s122_s18 }
  0x49   :  { %p231_p7 = scmp.ne.s32.totalorder %s113_s17, %s230_s19  ;;  %p235_p8 = scmp.lt.s32.totalorder %s113_s17, %s113_s17 }
  0x4a   :  { %s77_s0 = smul.f32 %s160_s11, %s373_s3  ;;  %v81_v16 = vstv %s155_s12  ;;  %p236_p9 = scmp.lt.s32.totalorder %s230_s19, %s230_s19 }
  0x4b   :  { %v82_v20 = vmul.f32 %v81_v16, %v58_v0  ;;  %v84_v21 = vstv %s389_s13 }
  0x4c   :  { %v78_v15 = vstv %s77_s0  ;;  %p237_p10 = por %p236_p9, %p235_p8 }
  0x4e   :  { %p238_p11 = pnand %p237_p10, %p231_p7 }
  0x4f   :  { %v171_v13 = vpop.eup %170 }
  0x50   :  { %v73_v14 = vadd.f32 1.0, %v171_v13 }
  0x52   :  { %172 = vrcp.f32 %v73_v14 }
  0x5c   :  { %v173_v17 = vpop.eup %172 }
  0x5d   :  { %93 = vst [vmem:[#allocation8] sm:$0xff] %v173_v17  ;;  %v79_v19 = vmul.f32 %v173_v17, %v78_v15 }
  0x5e   :  { %241 = shalt.err (!%p238_p11)
}
  0x5f   :  { %s242_s22 = scalar_lea.hbm %s439_s5, 128 }
  0x60   :  { %p243_p12 = scmp.ne.s32.totalorder %s439_s5, %s242_s22  ;;  %p246_p13 = scmp.lt.u32.totalorder %s242_s22, %s439_s5 }
  0x62   :  { %p248_p0 = pnand %p246_p13, %p243_p12 }
  0x64   :  { %251 = shalt.err (!%p248_p0)
}
  0x65   :  { %115 = dma.vmem_to_hbm [thread:$0]  %s113_s17, 128, %s439_s5, [#allocation9]   ;;  %v80_v22 = vadd.f32 %v79_v19, %v76_v18  ;;  %v86_v23 = vstv %s391_s14  ;;  %v89_v24 = vstv %s393_s15  ;;  %v85_v26 = vmul.f32 %v169_v10, %v84_v21 }
  0x66   :  { %v90_v28 = vmul.f32 %v173_v17, %v89_v24  ;;  %s311_s26 = smov [#allocation11]   ;;  %s252_s28 = scalar_lea.vmem %s123_s18, 128 }
  0x67   :  { %v83_v25 = vadd.f32 %v82_v20, %v80_v22  ;;  %s132_s27 = sshll.u32 %s311_s26, 4  ;;  %p253_p1 = scmp.ne.s32.totalorder %s123_s18, %s252_s28  ;;  %s133_s27 = int_to_ptr.vmem [resolvable:$true] %s132_s27 }
  0x68   :  { %p257_p2 = scmp.lt.s32.totalorder %s123_s18, %s123_s18  ;;  %p258_p3 = scmp.lt.s32.totalorder %s252_s28, %s252_s28 }
  0x69   :  { %v87_v27 = vmul.f32 %v86_v23, %v83_v25  ;;  %94 = vst [vmem:[#allocation10] sm:$0xff] %v83_v25 }
  0x6a   :  { %p259_p4 = por %p258_p3, %p257_p2 }
  0x6c   :  { %p260_p5 = pnand %p259_p4, %p253_p1 }
  0x6e   :  { %263 = shalt.err (!%p260_p5)
}
  0x6f   :  { %s264_s30 = scalar_lea.hbm %s440_s6, 128 }
  0x70   :  { %p265_p6 = scmp.ne.s32.totalorder %s440_s6, %s264_s30  ;;  %p268_p7 = scmp.lt.u32.totalorder %s264_s30, %s440_s6 }
  0x72   :  { %p270_p8 = pnand %p268_p7, %p265_p6 }
  0x74   :  { %273 = shalt.err (!%p270_p8)
}
  0x75   :  { %125 = dma.vmem_to_hbm [thread:$0]  %s123_s18, 128, %s440_s6, [#allocation9]   ;;  %v88_v29 = vadd.f32 %v87_v27, %v85_v26 }
  0x76   :  { %s274_s13 = scalar_lea.vmem %s133_s27, 128  ;;  %p279_p10 = scmp.lt.s32.totalorder %s133_s27, %s133_s27 }
  0x77   :  { %v91_v30 = vadd.f32 %v90_v28, %v88_v29  ;;  %p275_p9 = scmp.ne.s32.totalorder %s133_s27, %s274_s13  ;;  %p280_p11 = scmp.lt.s32.totalorder %s274_s13, %s274_s13 }
  0x79   :  { %95 = vst [vmem:[#allocation11] sm:$0xff] %v91_v30  ;;  %p281_p12 = por %p280_p11, %p279_p10 }
  0x7b   :  { %p282_p13 = pnand %p281_p12, %p275_p9 }
  0x7d   :  { %285 = shalt.err (!%p282_p13)
}
  0x7e   :  { %s286_s16 = scalar_lea.hbm %s441_s7, 128 }
  0x7f   :  { %p287_p0 = scmp.ne.s32.totalorder %s441_s7, %s286_s16  ;;  %p290_p1 = scmp.lt.u32.totalorder %s286_s16, %s441_s7 }
  0x81   :  { %p292_p2 = pnand %p290_p1, %p287_p0 }
  0x83   :  { %295 = shalt.err (!%p292_p2)
}
  0x84   :  { %135 = dma.vmem_to_hbm [thread:$0]  %s133_s27, 128, %s441_s7, [#allocation12]  }
  0x85   :  { %300 = dma.done.wait [#allocation4], 128  }
  0x86   :  { %301 = vsyncadd [#allocation4], 4294967168 }
  0x87   :  { %302 = dma.done.wait [#allocation9], 256  }
  0x88   :  { %303 = vsyncadd [#allocation9], 4294967040 }
  0x89   :  { %304 = dma.done.wait [#allocation12], 128  }
  0x8a   :  { %305 = vsyncadd [#allocation12], 4294967168 }
  0x8b   :  { %148 = vsyncpa [#allocation3], 1 }
  0x8c   :  { %149 = vsyncpa [#allocation4], 1 }
  0x8d   :  { %150 = vsyncpa [#allocation9], 1 }
  0x8e   :  { %151 = vsyncpa [#allocation12], 1 }
  0x8f   :  { %152 = vsyncpa [#allocation5], 1 }

</bundles_post_ra>
